<compile_context>
chip_gen: v7x
topology: tpu7x:2x2x1
jax: 0.10.0
libtpu: 0.0.40
codegen_flags: <defaults>
</compile_context>

<pallas_src>
import math

import jax
import jax.numpy as jnp
from jax.experimental import pallas as pl
from jax.experimental.pallas import tpu as pltpu


# ---------------------------------------------------------------------------
# Pallas kernel: y = x @ W + b   (W, b are the folded two-layer affine)
# ---------------------------------------------------------------------------
def _fused_affine_kernel(x_ref, w_ref, b_ref, o_ref):
    # x_ref: (TM, K)   w_ref: (K, N)   b_ref: (1, N)   o_ref: (TM, N)
    y = jnp.dot(x_ref[...], w_ref[...], preferred_element_type=jnp.float32)
    o_ref[...] = (y + b_ref[...]).astype(o_ref.dtype)


def fused_linear2(x, w1, b1, w2, b2, *, target_tm=1024, compute_dtype=None):
    """Two-layer affine stack, folded into a single matmul Pallas kernel.

    (x @ W1 + b1) @ W2 + b2  ==  x @ (W1 @ W2) + (b1 @ W2 + b2)
    which is exact (up to fp rounding) because the module has no nonlinearity
    between the two Linear layers.
    """
    m, k = x.shape
    n = w2.shape[1]

    # Fold the tiny weights once in the wrapper (K, 32) @ (32, N) -> (K, N).
    w = jnp.dot(w1.astype(jnp.float32), w2.astype(jnp.float32))
    b = (jnp.dot(b1.astype(jnp.float32), w2.astype(jnp.float32))
         + b2.astype(jnp.float32)).reshape(1, n)

    # Optional bf16 activation/weight stream (halves HBM read traffic; keep
    # f32 accumulation).  Off by default to match module numerics exactly.
    if compute_dtype is not None:
        x = x.astype(compute_dtype)
        w = w.astype(compute_dtype)

    # Adaptive, 8-aligned row tile: near-even tiles so padding waste is < 8
    # rows per tile (instead of up to tm-1 rows with a fixed tile size).
    nt = max(1, pl.cdiv(m, target_tm))
    tm = pl.cdiv(pl.cdiv(m, nt), 8) * 8
    m_pad = pl.cdiv(m, tm) * tm
    if m_pad != m:
        x = jnp.pad(x, ((0, m_pad - m), (0, 0)))

    grid = (m_pad // tm,)
    bpe = jnp.dtype(x.dtype).itemsize
    cost = pl.CostEstimate(
        flops=2 * m_pad * k * n,
        transcendentals=0,
        bytes_accessed=bpe * (m_pad * k + k * n) + 4 * (n + m_pad * n),
    )

    out = pl.pallas_call(
        _fused_affine_kernel,
        out_shape=jax.ShapeDtypeStruct((m_pad, n), jnp.float32),
        grid_spec=pltpu.PrefetchScalarGridSpec(
            num_scalar_prefetch=0,
            grid=grid,
            in_specs=[
                pl.BlockSpec((tm, k), lambda i: (i, 0)),   # row tile of x
                pl.BlockSpec((k, n), lambda i: (0, 0)),    # resident folded W
                pl.BlockSpec((1, n), lambda i: (0, 0)),    # resident folded b
            ],
            out_specs=pl.BlockSpec((tm, n), lambda i: (i, 0)),
        ),
        compiler_params=pltpu.CompilerParams(
            # Row tiles are independent; on v7x switch to CORE_PARALLEL /
            # core_map to genuinely split tiles across the 2 TensorCores.
            dimension_semantics=("parallel",),
            # Per-tile working set is only a few MiB even at tm=2048
            # (lane-padded (tm,128) f32 buffers), so 32 MiB is safe on
            # v5e / v6e / v7x.
            vmem_limit_bytes=32 * 1024 * 1024,
        ),
        cost_estimate=cost,
    )(x, w, b)
    return out[:m]


def _linear2_ref(x, w1, b1, w2, b2):
    return (x @ w1 + b1) @ w2 + b2


# ---------------------------------------------------------------------------
# GraphNetwork forward (graph plumbing in plain JAX)
# ---------------------------------------------------------------------------
def _scatter_mean(values, index, num_segments):
    s = jax.ops.segment_sum(values, index, num_segments=num_segments)
    cnt = jax.ops.segment_sum(jnp.ones((values.shape[0], 1), values.dtype),
                              index, num_segments=num_segments)
    return s / jnp.maximum(cnt, 1.0)


def graph_network_forward(params, node_features, edge_index, edge_features,
                          global_features, batch=None, *, is_undirected=True,
                          residual_connection=True, linear2=fused_linear2):
    n_nodes = node_features.shape[0]
    n_graphs = global_features.shape[0]
    if batch is None:
        batch = jnp.zeros((n_nodes,), dtype=jnp.int32)

    node_copy, edge_copy, global_copy = node_features, edge_features, global_features

    if is_undirected:
        edge_index = jnp.concatenate([edge_index, edge_index[::-1]], axis=1)
        e_len = edge_features.shape[0]
        edge_features = jnp.concatenate([edge_features, edge_features], axis=0)

    src, dst = edge_index[0], edge_index[1]
    edge_batch_map = batch[src]

    # TODO(synk): data-dependent gathers (node_features[src/dst],
    # global_features[batch/edge_batch_map]), the concats and scatter_mean
    # aggregation stay in plain JAX; only the dense affine stacks run in Pallas.

    # ---- edge update ----------------------------------------------------
    edge_in = jnp.concatenate(
        [node_features[src], node_features[dst], edge_features,
         global_features[edge_batch_map]], axis=1)
    edge_features = linear2(edge_in, params["edge_w1"], params["edge_b1"],
                            params["edge_w2"], params["edge_b2"])

    # ---- node update ----------------------------------------------------
    edge_mean_by_node = _scatter_mean(edge_features, dst, n_nodes)
    node_in = jnp.concatenate(
        [node_features, edge_mean_by_node, global_features[batch]], axis=1)
    node_features = linear2(node_in, params["node_w1"], params["node_b1"],
                            params["node_w2"], params["node_b2"])

    # ---- global update --------------------------------------------------
    edge_mean = _scatter_mean(edge_features, edge_batch_map, n_graphs)
    node_mean = _scatter_mean(node_features, batch, n_graphs)
    global_in = jnp.concatenate([edge_mean, node_mean, global_features], axis=1)
    global_features = linear2(global_in, params["glob_w1"], params["glob_b1"],
                              params["glob_w2"], params["glob_b2"])

    if is_undirected:
        edge_features = (edge_features[:e_len] + edge_features[e_len:]) / 2.0

    if residual_connection:
        edge_features = edge_features + edge_copy
        node_features = node_features + node_copy
        global_features = global_features + global_copy

    return node_features, edge_features, global_features


# ---------------------------------------------------------------------------
# Demo / correctness check
# ---------------------------------------------------------------------------
if __name__ == "__main__":
    n_nodes, n_node_features = 5, 10
    n_edges, n_edge_features = 5, 2
    n_global_features = 4
    hidden = 32

    key = jax.random.PRNGKey(0)
    keys = jax.random.split(key, 16)

    def linear_init(kw, kb, fan_in, fan_out):
        bound = 1.0 / math.sqrt(fan_in)
        w = jax.random.uniform(kw, (fan_in, fan_out), jnp.float32,
                               minval=-bound, maxval=bound)
        b = jax.random.uniform(kb, (fan_out,), jnp.float32,
                               minval=-bound, maxval=bound)
        return w, b

    edge_in_dim = 2 * n_node_features + n_edge_features + n_global_features
    node_in_dim = n_node_features + n_edge_features + n_global_features
    glob_in_dim = n_node_features + n_edge_features + n_global_features

    params = {}
    params["edge_w1"], params["edge_b1"] = linear_init(keys[0], keys[1], edge_in_dim, hidden)
    params["edge_w2"], params["edge_b2"] = linear_init(keys[2], keys[3], hidden, n_edge_features)
    params["node_w1"], params["node_b1"] = linear_init(keys[4], keys[5], node_in_dim, hidden)
    params["node_w2"], params["node_b2"] = linear_init(keys[6], keys[7], hidden, n_node_features)
    params["glob_w1"], params["glob_b1"] = linear_init(keys[8], keys[9], glob_in_dim, hidden)
    params["glob_w2"], params["glob_b2"] = linear_init(keys[10], keys[11], hidden, n_global_features)

    node_features = jax.random.normal(keys[12], (n_nodes, n_node_features), jnp.float32)
    edge_features = jax.random.normal(keys[13], (n_edges, n_edge_features), jnp.float32)
    global_features = jax.random.normal(keys[14], (1, n_global_features), jnp.float32)
    edge_index = jnp.array([[0, 1, 2, 3, 4], [1, 2, 3, 4, 0]], dtype=jnp.int32)

    # Pallas-backed forward
    node_out, edge_out, glob_out = graph_network_forward(
        params, node_features, edge_index, edge_features, global_features,
        linear2=fused_linear2)
    node_out, edge_out, glob_out = jax.block_until_ready(
        (node_out, edge_out, glob_out))

    # Pure-JAX reference (identical graph plumbing, unfolded jnp matmuls)
    node_ref, edge_ref, glob_ref = graph_network_forward(
        params, node_features, edge_index, edge_features, global_features,
        linear2=_linear2_ref)

    assert node_out.shape == (n_nodes, n_node_features)
    assert edge_out.shape == (n_edges, n_edge_features)
    assert glob_out.shape == (1, n_global_features)
    assert jnp.allclose(node_out, node_ref, atol=1e-4, rtol=1e-4)
    assert jnp.allclose(edge_out, edge_ref, atol=1e-4, rtol=1e-4)
    assert jnp.allclose(glob_out, glob_ref, atol=1e-4, rtol=1e-4)

    print("KERNEL_OK")
</pallas_src>

<mosaic_0001>
module attributes {stable_mosaic.version = 11 : i64} {
  func.func @_fused_affine_kernel(%arg0: i32, %arg1: memref<16x26xf32, #tpu.memory_space<vmem>>, %arg2: memref<26x2xf32, #tpu.memory_space<vmem>>, %arg3: memref<1x2xf32, #tpu.memory_space<vmem>>, %arg4: memref<16x2xf32, #tpu.memory_space<vmem>>) attributes {dimension_semantics = [#tpu.dimension_semantics<parallel>], iteration_bounds = array<i64: 1>, scalar_prefetch = 0 : i64, scratch_operands = 0 : i64, tpu.core_type = #tpu.core_type<tc>, window_params = [{transform_indices = @transform_0, window_bounds = array<i64: 16, 26>}, {pipeline_mode = #tpu.pipeline_mode<synchronous>, transform_indices = @transform_1, window_bounds = array<i64: 26, 2>}, {pipeline_mode = #tpu.pipeline_mode<synchronous>, transform_indices = @transform_2, window_bounds = array<i64: 1, 2>}, {transform_indices = @transform_3, window_bounds = array<i64: 16, 2>}]} {
    %c0 = arith.constant 0 : index
    %c0_0 = arith.constant 0 : index
    %0 = vector.load %arg1[%c0, %c0_0] : memref<16x26xf32, #tpu.memory_space<vmem>>, vector<16x26xf32>
    %c0_1 = arith.constant 0 : index
    %c0_2 = arith.constant 0 : index
    %1 = vector.load %arg2[%c0_1, %c0_2] : memref<26x2xf32, #tpu.memory_space<vmem>>, vector<26x2xf32>
    %cst = arith.constant dense<0.000000e+00> : vector<16x2xf32>
    %2 = tpu.matmul %0, %1, %cst {dimension_numbers = #tpu.dot_dimension_numbers<[1], [0], [0], [1], [0, 0, 1, 1], [], []>} : vector<16x26xf32>, vector<26x2xf32>, vector<16x2xf32> -> vector<16x2xf32>
    %c0_3 = arith.constant 0 : index
    %c0_4 = arith.constant 0 : index
    %3 = vector.load %arg3[%c0_3, %c0_4] : memref<1x2xf32, #tpu.memory_space<vmem>>, vector<1x2xf32>
    %4 = vector.broadcast %3 : vector<1x2xf32> to vector<16x2xf32>
    %5 = arith.addf %2, %4 : vector<16x2xf32>
    %c0_5 = arith.constant 0 : index
    %c0_6 = arith.constant 0 : index
    %6 = vector.load %arg4[%c0_5, %c0_6] : memref<16x2xf32, #tpu.memory_space<vmem>>, vector<16x2xf32>
    tpu.vector_store %arg4[%c0_5, %c0_6], %5 {strides = array<i32>} : memref<16x2xf32, #tpu.memory_space<vmem>>, vector<16x2xf32>,
    return
  }
  func.func @transform_0(%arg0: i32) -> (i32, i32) {
    %c0_i32 = arith.constant 0 : i32
    %c0_i32_0 = arith.constant 0 : i32
    return %arg0, %c0_i32 : i32, i32
  }
  func.func @transform_1(%arg0: i32) -> (i32, i32) {
    %c0_i32 = arith.constant 0 : i32
    %c0_i32_0 = arith.constant 0 : i32
    %c0_i32_1 = arith.constant 0 : i32
    return %c0_i32, %c0_i32_0 : i32, i32
  }
  func.func @transform_2(%arg0: i32) -> (i32, i32) {
    %c0_i32 = arith.constant 0 : i32
    %c0_i32_0 = arith.constant 0 : i32
    %c0_i32_1 = arith.constant 0 : i32
    return %c0_i32, %c0_i32_0 : i32, i32
  }
  func.func @transform_3(%arg0: i32) -> (i32, i32) {
    %c0_i32 = arith.constant 0 : i32
    %c0_i32_0 = arith.constant 0 : i32
    return %arg0, %c0_i32 : i32, i32
  }
}

</mosaic_0001>

<bundles_post_ra>
// kernel: tpu_custom_call.1
= control target key start
LH: loop header
LB: loop body
LE: loop exit
PB: predicated region body
PF: predicated region fallthrough
CT: control target
= control target key end

     0   :  { %vm34_vm0 = vcmask 1041408   ;;  %vm27_vm1 = vcmask 211968   ;;  %vm152_vm2 = vmmov 1   ;;  %vm113_vm4 = vcmask 15360   ;;  %s202_s1 = inlined_call_operand.vmem [shape: f32[26,2], index: 1, kind: input, shape index: {}]   ;;  %s203_s0 = inlined_call_operand.vmem [shape: f32[16,26], index: 0, kind: input, shape index: {}]   ;;  %s204_s2 = inlined_call_operand.vmem [shape: f32[1,2], index: 2, kind: input, shape index: {}]   ;;  %s205_s3 = inlined_call_operand.vmem [shape: f32[16,2], index: 3, kind: output, shape index: {}]  }
   0x1   :  { %v16_v0 = vld [vmem:[%s202_s1] sm:$0xff]  ;;  %v17_v1 = vld [vmem:[%s202_s1 + $0x8] sm:$0xff]  ;;  %v18_v2 = vld [vmem:[%s202_s1 + $0x10] sm:$0xff] }
   0x2   :  { %v141_v3 = vpack.c.bf16 %v17_v1, %v16_v0  ;;  %v19_v4 = vld [vmem:[%s202_s1 + $0x18] sm:$0x3]  ;;  %v14_v5 = vld [vmem:[%s203_s0] sm:$0xff]  ;;  %vm146_vm3 = vmpackc.low %vm34_vm0, %vm152_vm2 }
   0x3   :  { %v145_v6 = vpack.c.bf16 %v19_v4, %v18_v2  ;;  %138 = vmatprep.mubr.msk.f32.mxu0 %vm27_vm1, %v14_v5  ;;  %v15_v7 = vld [vmem:[%s203_s0 + $0x8] sm:$0xff]  ;;  %v120_v8 = vld [vmem:[%s204_s2] ss:$0 sm:$0xff] }
   0x4   :  { %142 = vmatprep.subr.bf16.mxu0 %v141_v3 }
   0x5   :  { %144 = vmatpush3.bf16.msra.mxu0 %v141_v3 }
   0x6   :  { %147 = vmatprep.subr.msk.bf16.mxu0 %vm146_vm3, %v145_v6 }
   0x9   :  { %150 = vmatpush3.bf16.msk.msra.mxu0 %vm146_vm3, %v145_v6 }
   0xc   :  { %139 = vmatmul.mubr.msk.f32.vlgmr.msra.gmra.mrb[0].mxu0 %vm27_vm1, %v15_v7 }
  0xdf   :  { %v140_v9 = vpop.f32.mrb[0].mxu0 }
  0xe0   :  { %v110_v10 = vadd.f32 %v140_v9, %v120_v8  ;;  %v104_v11 = vpop.f32.mrb[1].mxu0 }
  0xe1   :  { %v105_v12 = vadd.f32 %v120_v8, %v104_v11 }
  0xe2   :  { %115 = vst.msk [vmem:[%s205_s3 + $0x8] sm:$0xff] %vm113_vm4, %v110_v10 }
  0xe3   :  { %114 = vst.msk [vmem:[%s205_s3] sm:$0xff] %vm113_vm4, %v105_v12 }

</bundles_post_ra>
